<compile_context>
chip_gen: v7x
topology: tpu7x:2x2x1
jax: 0.10.0
libtpu: 0.0.40
codegen_flags: <defaults>
</compile_context>

<pallas_src>
import functools
import math

import jax
import jax.numpy as jnp
from jax.experimental import pallas as pl
from jax.experimental.pallas import tpu as pltpu


def _ln_kernel(x_ref, gb_ref, o_ref, *, eps):
    x = x_ref[...].astype(jnp.float32)          # (tr, n): cast on load, n on lanes
    gamma = gb_ref[0:1, :]                      # (1, n) f32, broadcast over rows
    beta = gb_ref[1:2, :]
    mean = jnp.mean(x, axis=-1, keepdims=True)
    centered = x - mean
    var = jnp.mean(centered * centered, axis=-1, keepdims=True)
    inv_std = jax.lax.rsqrt(var + eps)          # EUP rsqrt (no VALU divide/sqrt)
    o_ref[...] = ((centered * inv_std) * gamma + beta).astype(o_ref.dtype)


def _round_down_to(v, m):
    return max(m, (v // m) * m)


def layer_norm(x, gamma, beta, eps=1e-5, *, row_block=None,
               vmem_budget_bytes=24 * 1024 * 1024):
    """LayerNormalization.forward: normalize over the trailing gamma.ndim axes."""
    param_ndim = gamma.ndim
    norm_shape = x.shape[x.ndim - param_ndim:]
    assert gamma.shape == norm_shape and beta.shape == norm_shape, (
        gamma.shape, beta.shape, norm_shape)
    lead_shape = x.shape[: x.ndim - param_ndim]

    n = math.prod(norm_shape)
    r = math.prod(lead_shape) if lead_shape else 1

    # Keep x in its native dtype (no HBM-resident f32 copy); params in f32.
    x2 = x.reshape(r, n)
    gb = jnp.stack([gamma.reshape(n).astype(jnp.float32),
                    beta.reshape(n).astype(jnp.float32)])          # (2, n)

    xb = jnp.dtype(x.dtype).itemsize

    if row_block is not None:
        tr = int(row_block)
    else:
        # Per-step VMEM ~= 2 buffers x (in + out) x tr x n x itemsize.
        per_row_bytes = 2 * n * (xb + xb)
        tr = _round_down_to(vmem_budget_bytes // max(per_row_bytes, 1), 16)
        tr = min(tr, 1024)
        # Prefer >= ~4 grid steps when there are enough rows so the row axis can
        # shard across TensorCores (v7x has 2 TCs) and the pipeline stays busy.
        if r >= 64:
            tr = min(tr, _round_down_to(-(-r // 4), 16))
    if r <= tr:
        tr = r          # single full block: no (8/16)-divisibility constraint
    grid = pl.cdiv(r, tr)

    # Scoped-VMEM limit sized to the actual step footprint (v5e default is only
    # 16 MiB; v7x physical is 64 MiB, so the budget above keeps us well under).
    step_bytes = 2 * tr * n * 2 * xb + 2 * (2 * n * 4) + (1 << 20)
    vmem_limit = int(min(100 * 1024 * 1024,
                         max(32 * 1024 * 1024, step_bytes + (8 << 20))))

    out = pl.pallas_call(
        functools.partial(_ln_kernel, eps=float(eps)),
        out_shape=jax.ShapeDtypeStruct((r, n), x.dtype),
        grid=(grid,),
        in_specs=[pl.BlockSpec((tr, n), lambda i: (i, 0)),
                  pl.BlockSpec((2, n), lambda i: (0, 0))],
        out_specs=pl.BlockSpec((tr, n), lambda i: (i, 0)),
        compiler_params=pltpu.CompilerParams(
            dimension_semantics=("parallel",),
            vmem_limit_bytes=vmem_limit),
    )(x2, gb)

    return out.reshape(x.shape)


def layer_norm_ref(x, gamma, beta, eps=1e-5):
    """Pure-JAX reference mirroring the PyTorch forward (f32 math)."""
    xf = x.astype(jnp.float32)
    dims = tuple(range(x.ndim - gamma.ndim, x.ndim))
    mean = xf.mean(axis=dims, keepdims=True)
    var = ((xf - mean) ** 2).mean(axis=dims, keepdims=True)
    out = (gamma.astype(jnp.float32) * (xf - mean) / jnp.sqrt(var + eps)
           + beta.astype(jnp.float32))
    return out.astype(x.dtype)


if __name__ == "__main__":
    key = jax.random.PRNGKey(0)
    kx, kg, kb, kx2 = jax.random.split(key, 4)

    B, S, D = 2, 8, 128                     # lane-dense feature dim
    x = jax.random.normal(kx, (B, S, D), dtype=jnp.float32)
    gamma = 1.0 + 0.1 * jax.random.normal(kg, (D,), dtype=jnp.float32)
    beta = 0.1 * jax.random.normal(kb, (D,), dtype=jnp.float32)

    # 1) parameters_shape = [D]  (normalize over last dim), f32 path
    y = layer_norm(x, gamma, beta)
    jax.block_until_ready(y)
    assert y.shape == x.shape and y.dtype == x.dtype
    assert bool(jnp.all(jnp.isfinite(y)))
    assert bool(jnp.allclose(y, layer_norm_ref(x, gamma, beta),
                             atol=2e-5, rtol=2e-5))

    # 2) bf16 activations: native-dtype DMA + in-kernel f32 cast
    xb16 = jax.random.normal(kx2, (4, S, D), dtype=jnp.float32).astype(jnp.bfloat16)
    yb16 = layer_norm(xb16, gamma, beta)
    jax.block_until_ready(yb16)
    assert yb16.dtype == jnp.bfloat16
    assert bool(jnp.allclose(yb16.astype(jnp.float32),
                             layer_norm_ref(xb16, gamma, beta).astype(jnp.float32),
                             atol=3e-2, rtol=3e-2))

    # 3) parameters_shape = [S, D]  (normalize over last two dims)
    gamma2 = jnp.ones((S, D), jnp.float32)
    beta2 = jnp.zeros((S, D), jnp.float32)
    y2 = layer_norm(x, gamma2, beta2)
    jax.block_until_ready(y2)
    assert bool(jnp.allclose(y2, layer_norm_ref(x, gamma2, beta2),
                             atol=2e-5, rtol=2e-5))

    # 4) exercise the cdiv partial-last-block path (r=40 rows, 16-row tile)
    x3 = jax.random.normal(kx, (5, S, D), dtype=jnp.float32)
    y3 = layer_norm(x3, gamma, beta, row_block=16)
    jax.block_until_ready(y3)
    assert bool(jnp.allclose(y3, layer_norm_ref(x3, gamma, beta),
                             atol=2e-5, rtol=2e-5))

    print("KERNEL_OK")
</pallas_src>

<mosaic_0001>
module attributes {stable_mosaic.version = 11 : i64} {
  func.func @_ln_kernel(%arg0: i32, %arg1: memref<16x128xf32, #tpu.memory_space<vmem>>, %arg2: memref<2x128xf32, #tpu.memory_space<vmem>>, %arg3: memref<16x128xf32, #tpu.memory_space<vmem>>) attributes {dimension_semantics = [#tpu.dimension_semantics<parallel>], iteration_bounds = array<i64: 1>, scalar_prefetch = 0 : i64, scratch_operands = 0 : i64, tpu.core_type = #tpu.core_type<tc>, window_params = [{transform_indices = @transform_0, window_bounds = array<i64: 16, 128>}, {pipeline_mode = #tpu.pipeline_mode<synchronous>, transform_indices = @transform_1, window_bounds = array<i64: 2, 128>}, {transform_indices = @transform_2, window_bounds = array<i64: 16, 128>}]} {
    %c0 = arith.constant 0 : index
    %c0_0 = arith.constant 0 : index
    %0 = vector.load %arg1[%c0, %c0_0] : memref<16x128xf32, #tpu.memory_space<vmem>>, vector<16x128xf32>
    %c0_1 = arith.constant 0 : index
    %c0_2 = arith.constant 0 : index
    %1 = vector.load %arg2[%c0_1, %c0_2] : memref<2x128xf32, #tpu.memory_space<vmem>>, vector<1x128xf32>
    %c1 = arith.constant 1 : index
    %c0_3 = arith.constant 0 : index
    %2 = vector.load %arg2[%c1, %c0_3] : memref<2x128xf32, #tpu.memory_space<vmem>>, vector<1x128xf32>
    %cst = arith.constant dense<0.000000e+00> : vector<16xf32>
    %3 = vector.multi_reduction <add>, %0, %cst [1] : vector<16x128xf32> to vector<16xf32>
    %4 = vector.shape_cast %3 : vector<16xf32> to vector<16x1xf32>
    %cst_4 = arith.constant 1.280000e+02 : f32
    %5 = vector.broadcast %cst_4 : f32 to vector<16x1xf32>
    %6 = arith.divf %4, %5 : vector<16x1xf32>
    %7 = vector.broadcast %6 : vector<16x1xf32> to vector<16x128xf32>
    %8 = arith.subf %0, %7 : vector<16x128xf32>
    %9 = arith.mulf %8, %8 : vector<16x128xf32>
    %cst_5 = arith.constant dense<0.000000e+00> : vector<16xf32>
    %10 = vector.multi_reduction <add>, %9, %cst_5 [1] : vector<16x128xf32> to vector<16xf32>
    %11 = vector.shape_cast %10 : vector<16xf32> to vector<16x1xf32>
    %cst_6 = arith.constant 1.280000e+02 : f32
    %12 = vector.broadcast %cst_6 : f32 to vector<16x1xf32>
    %13 = arith.divf %11, %12 : vector<16x1xf32>
    %cst_7 = arith.constant 9.99999974E-6 : f32
    %14 = vector.broadcast %cst_7 : f32 to vector<16x1xf32>
    %15 = arith.addf %13, %14 : vector<16x1xf32>
    %16 = math.rsqrt %15 : vector<16x1xf32>
    %17 = vector.broadcast %16 : vector<16x1xf32> to vector<16x128xf32>
    %18 = arith.mulf %8, %17 : vector<16x128xf32>
    %19 = vector.broadcast %1 : vector<1x128xf32> to vector<16x128xf32>
    %20 = arith.mulf %18, %19 : vector<16x128xf32>
    %21 = vector.broadcast %2 : vector<1x128xf32> to vector<16x128xf32>
    %22 = arith.addf %20, %21 : vector<16x128xf32>
    %c0_8 = arith.constant 0 : index
    %c0_9 = arith.constant 0 : index
    %23 = vector.load %arg3[%c0_8, %c0_9] : memref<16x128xf32, #tpu.memory_space<vmem>>, vector<16x128xf32>
    tpu.vector_store %arg3[%c0_8, %c0_9], %22 {strides = array<i32>} : memref<16x128xf32, #tpu.memory_space<vmem>>, vector<16x128xf32>,
    return
  }
  func.func @transform_0(%arg0: i32) -> (i32, i32) {
    %c0_i32 = arith.constant 0 : i32
    %c0_i32_0 = arith.constant 0 : i32
    return %arg0, %c0_i32 : i32, i32
  }
  func.func @transform_1(%arg0: i32) -> (i32, i32) {
    %c0_i32 = arith.constant 0 : i32
    %c0_i32_0 = arith.constant 0 : i32
    %c0_i32_1 = arith.constant 0 : i32
    return %c0_i32, %c0_i32_0 : i32, i32
  }
  func.func @transform_2(%arg0: i32) -> (i32, i32) {
    %c0_i32 = arith.constant 0 : i32
    %c0_i32_0 = arith.constant 0 : i32
    return %arg0, %c0_i32 : i32, i32
  }
}

</mosaic_0001>

<bundles_post_ra>
// kernel: tpu_custom_call.1
= control target key start
LH: loop header
LB: loop body
LE: loop exit
PB: predicated region body
PF: predicated region fallthrough
CT: control target
= control target key end

     0   :  { %7 = vsyncpa [#allocation3], 0  ;;  %s197_s0 = inlined_call_operand.hbm [shape: f32[16,128], index: 0, kind: input, shape index: {}]   ;;  %s198_s1 = inlined_call_operand.vmem [shape: f32[2,128], index: 1, kind: input, shape index: {}]   ;;  %s199_s2 = inlined_call_operand.hbm [shape: f32[16,128], index: 2, kind: output, shape index: {}]  }
   0x1   :  { %8 = vsyncpa [#allocation4], 0  ;;  %s142_s9 = smov [#allocation2]   ;;  %s94_s13 = scalar_lea.hbm %s197_s0, 256 }
   0x2   :  { %s14_s10 = sshll.u32 %s142_s9, 4  ;;  %p95_p0 = scmp.ne.s32.totalorder %s197_s0, %s94_s13  ;;  %s15_s10 = int_to_ptr.vmem [resolvable:$true] %s14_s10 }
   0x3   :  { %p98_p1 = scmp.lt.u32.totalorder %s94_s13, %s197_s0 }
   0x5   :  { %p100_p2 = pnand %p98_p1, %p95_p0 }
   0x7   :  { %103 = shalt.err (!%p100_p2)
}
   0x8   :  { %s104_s18 = scalar_lea.vmem %s15_s10, 256  ;;  %p109_p4 = scmp.lt.s32.totalorder %s15_s10, %s15_s10 }
   0x9   :  { %p105_p3 = scmp.ne.s32.totalorder %s15_s10, %s104_s18  ;;  %p110_p5 = scmp.lt.s32.totalorder %s104_s18, %s104_s18 }
   0xb   :  { %p111_p6 = por %p110_p5, %p109_p4 }
   0xd   :  { %p112_p7 = pnand %p111_p6, %p105_p3 }
   0xf   :  { %115 = shalt.err (!%p112_p7)
}
  0x10   :  { %s143_s19 = smov 128   ;;  %s144_s20 = smov 8  }
  0x11   :  { %20 = dma.hbm_to_vmem [thread:$0]  %s197_s0, 256, %s15_s10, [#allocation3], %s143_s19, %s143_s19, %s144_s20  }
  0x12   :  { %138 = dma.done.wait [#allocation3], 256  }
  0x13   :  { %139 = vsyncadd [#allocation3], 4294967040  ;;  %v26_v0 = vld [vmem:[#allocation2] sm:$0xff]  ;;  %v27_v1 = vld [vmem:[#allocation2 + $0x8] sm:$0xff]  ;;  %s145_s26 = smov [#allocation5]  }
  0x14   :  { %30 = vadd.xlane.f32.xlu0 %v26_v0  ;;  %v84_v17 = vld [vmem:[%s198_s1] ss:$0 sm:$0xff]  ;;  %v85_v19 = vld [vmem:[%s198_s1 + $0x1] ss:$0 sm:$0xff]  ;;  %s72_s27 = sshll.u32 %s145_s26, 4  ;;  %s73_s27 = int_to_ptr.vmem [resolvable:$true] %s72_s27 }
  0x15   :  { %s116_s28 = scalar_lea.vmem %s73_s27, 256  ;;  %p121_p9 = scmp.lt.s32.totalorder %s73_s27, %s73_s27 }
  0x16   :  { %p117_p8 = scmp.ne.s32.totalorder %s73_s27, %s116_s28  ;;  %p122_p10 = scmp.lt.s32.totalorder %s116_s28, %s116_s28 }
  0x18   :  { %32 = vadd.xlane.f32.xlu0 %v27_v1  ;;  %p123_p11 = por %p122_p10, %p121_p9 }
  0x1a   :  { %p124_p12 = pnand %p123_p11, %p117_p8 }
  0xa1   :  { %v31_v2 = vpop.xlane.xlu0 %30 }
  0xa2   :  { %v35_v3 = vmul.f32 0.0078125, %v31_v2 }
  0xa4   :  { %v37_v4 = vsub.f32 %v26_v0, %v35_v3 }
  0xa5   :  { %v33_v5 = vpop.xlane.xlu0 %32 }
  0xa6   :  { %v36_v6 = vmul.f32 0.0078125, %v33_v5  ;;  %v39_v7 = vmul.f32 %v37_v4, %v37_v4 }
  0xa8   :  { %v38_v8 = vsub.f32 %v27_v1, %v36_v6  ;;  %41 = vadd.xlane.f32.xlu1 %v39_v7 }
  0xaa   :  { %v40_v9 = vmul.f32 %v38_v8, %v38_v8 }
  0xac   :  { %43 = vadd.xlane.f32.xlu1 %v40_v9 }
 0x135   :  { %v42_v10 = vpop.xlane.xlu1 %41 }
 0x136   :  { %v45_v11 = vmul.f32 0.0078125, %v42_v10 }
 0x138   :  { %v47_v12 = vadd.f32 1e-05, %v45_v11 }
 0x139   :  { %v44_v13 = vpop.xlane.xlu1 %43 }
 0x13a   :  { %90 = vrsqrt.f32 %v47_v12  ;;  %v46_v14 = vmul.f32 0.0078125, %v44_v13 }
 0x13c   :  { %v48_v15 = vadd.f32 1e-05, %v46_v14 }
 0x13e   :  { %92 = vrsqrt.f32 %v48_v15 }
 0x144   :  { %v91_v16 = vpop.eup %90 }
 0x145   :  { %v51_v18 = vmul.f32 %v91_v16, %v37_v4 }
 0x147   :  { %v57_v20 = vmul.f32 %v84_v17, %v51_v18 }
 0x148   :  { %v93_v21 = vpop.eup %92 }
 0x149   :  { %v52_v22 = vmul.f32 %v93_v21, %v38_v8  ;;  %v63_v23 = vadd.f32 %v85_v19, %v57_v20 }
 0x14b   :  { %v58_v24 = vmul.f32 %v84_v17, %v52_v22  ;;  %65 = vst [vmem:[#allocation5] sm:$0xff] %v63_v23 }
 0x14d   :  { %v64_v25 = vadd.f32 %v85_v19, %v58_v24 }
 0x14f   :  { %66 = vst [vmem:[#allocation5 + $0x8] sm:$0xff] %v64_v25 }
 0x150   :  { %127 = shalt.err (!%p124_p12)
}
 0x151   :  { %s128_s30 = scalar_lea.hbm %s199_s2, 256 }
 0x152   :  { %p129_p13 = scmp.ne.s32.totalorder %s199_s2, %s128_s30  ;;  %p132_p0 = scmp.lt.u32.totalorder %s128_s30, %s199_s2 }
 0x154   :  { %p134_p1 = pnand %p132_p0, %p129_p13 }
 0x156   :  { %137 = shalt.err (!%p134_p1)
}
 0x157   :  { %78 = dma.vmem_to_hbm [thread:$0]  %s73_s27, 256, %s199_s2, [#allocation4], %s143_s19, %s143_s19, %s144_s20  }
 0x158   :  { %140 = dma.done.wait [#allocation4], 256  }
 0x159   :  { %141 = vsyncadd [#allocation4], 4294967040 }
 0x15a   :  { %82 = vsyncpa [#allocation3], 1 }
 0x15b   :  { %83 = vsyncpa [#allocation4], 1 }

</bundles_post_ra>
